<compile_context>
chip_gen: v7x
topology: tpu7x:2x2x1
jax: 0.10.0
libtpu: 0.0.40
codegen_flags: <defaults>
</compile_context>

<pallas_src>
import functools
from math import sqrt

import jax
import jax.numpy as jnp
from jax.experimental import pallas as pl
from jax.experimental.pallas import tpu as pltpu

NEG_SLOPE = 0.01  # F.leaky_relu default negative slope


def _leaky(x):
    return jnp.where(x >= 0, x, NEG_SLOPE * x)


# ----------------------------------------------------------------------------- kernel
def _make_stack_kernel(size_half: int, i_affine: int, num_layers: int):
    """Kernel over a (tile_n, D) block of phi, applying `num_layers` coupling layers
    with alternating parity starting at `i_affine`.

    Fused per-layer weights (leading axis = layer):
      w1: (L, 2*hidden, H)   = [s_w1^T ; t_w1^T]
      b1: (L, 2*hidden, 1)
      w2: (L, 2*H, 2*hidden)  block-diag([s_w2^T, t_w2^T])
      b2: (L, 2*H, 1)
    """
    H = size_half

    def kernel(phi_ref, w1_ref, b1_ref, w2_ref, b2_ref, out_ref):
        # One transpose in: (tile_n, D) -> (D, tile_n), batch on the 128-wide lane axis.
        xt = phi_ref[...].T

        for l in range(num_layers):  # static unroll; weights stay VMEM-resident
            even = ((i_affine + l) % 2 == 0)
            if even:
                a = xt[:H, :]        # pass-through half
                b = xt[H:, :]        # transformed half
            else:
                a = xt[H:, :]
                b = xt[:H, :]

            # Fused s|t layer 1: one MXU push -> (2*hidden, tile_n)
            h = _leaky(
                jnp.dot(w1_ref[l], a, preferred_element_type=jnp.float32)
                + b1_ref[l])
            # Fused block-diagonal layer 2: rows [0,H) = s_out, [H,2H) = t_out
            st = _leaky(
                jnp.dot(w2_ref[l], h, preferred_element_type=jnp.float32)
                + b2_ref[l])

            s_out = st[:H, :]
            t_out = st[H:, :]
            zb = jnp.exp(s_out) * b + t_out

            if even:
                xt = jnp.concatenate([a, zb], axis=0)
            else:
                xt = jnp.concatenate([zb, a], axis=0)

        # One transpose out + one full-block store.
        out_ref[...] = xt.T

    return kernel


# ----------------------------------------------------------------------------- wrapper
def _pick_tile_n(n: int, cap: int = 8192) -> int:
    """Largest multiple of 128 <= min(n, cap); full extent for tiny batches."""
    if n <= 128:
        return n
    return (min(n, cap) // 128) * 128


@functools.partial(jax.jit, static_argnames=("i_affine",))
def coupling_stack_forward(phi, w1, b1, w2, b2, *, i_affine):
    """phi: (N, D) f32 (PyTorch layout).  w1/b1/w2/b2: stacked fused params (L, ...).

    Applies L coupling layers (parity i_affine, i_affine+1, ...) in one pallas_call.
    L = 1 is exactly AffineLayer.forward.
    """
    N, D = phi.shape
    H = D // 2
    L = w1.shape[0]

    tile_n = _pick_tile_n(N)
    grid = (pl.cdiv(N, tile_n),)

    kernel = _make_stack_kernel(H, i_affine, L)

    two_hid = int(w1.shape[1])
    cost = pl.CostEstimate(
        flops=int(2 * N * (H * two_hid + two_hid * 2 * H) * L),
        transcendentals=int(N * H * L),
        bytes_accessed=int(2 * N * D * 4 + 4 * (w1.size + b1.size + w2.size + b2.size)),
    )

    return pl.pallas_call(
        kernel,
        out_shape=jax.ShapeDtypeStruct((N, D), jnp.float32),
        grid=grid,
        in_specs=[
            pl.BlockSpec((tile_n, D), lambda i: (i, 0)),     # phi batch tile
            pl.BlockSpec(w1.shape, lambda i: (0, 0, 0)),     # weights stay resident
            pl.BlockSpec(b1.shape, lambda i: (0, 0, 0)),
            pl.BlockSpec(w2.shape, lambda i: (0, 0, 0)),
            pl.BlockSpec(b2.shape, lambda i: (0, 0, 0)),
        ],
        out_specs=pl.BlockSpec((tile_n, D), lambda i: (i, 0)),
        compiler_params=pltpu.CompilerParams(
            dimension_semantics=("parallel",),               # shards tiles across TCs (v7x)
            vmem_limit_bytes=48 * 1024 * 1024),
        cost_estimate=cost,
    )(phi, w1, b1, w2, b2)


def affine_layer_forward(phi, packed_single, i_affine):
    """Single AffineLayer.forward.  packed_single = stack_packed([raw_params])."""
    w1, b1, w2, b2 = packed_single
    return coupling_stack_forward(phi, w1, b1, w2, b2, i_affine=i_affine)


# ----------------------------------------------------------------------------- params
def _linear_init(key, fan_in, fan_out):
    """nn.Linear default init: U(-1/sqrt(fan_in), 1/sqrt(fan_in)).
    Weight returned as (fan_in, fan_out); bias as (1, fan_out)."""
    k_w, k_b = jax.random.split(key)
    bound = 1.0 / sqrt(fan_in)
    w = jax.random.uniform(k_w, (fan_in, fan_out), jnp.float32, -bound, bound)
    b = jax.random.uniform(k_b, (1, fan_out), jnp.float32, -bound, bound)
    return w, b


def init_affine_layer_params(key, size_in, hidden):
    H = size_in // 2
    k1, k2, k3, k4 = jax.random.split(key, 4)
    s_w1, s_b1 = _linear_init(k1, H, hidden)
    s_w2, s_b2 = _linear_init(k2, hidden, H)
    t_w1, t_b1 = _linear_init(k3, H, hidden)
    t_w2, t_b2 = _linear_init(k4, hidden, H)
    return dict(s_w1=s_w1, s_b1=s_b1, s_w2=s_w2, s_b2=s_b2,
                t_w1=t_w1, t_b1=t_b1, t_w2=t_w2, t_b2=t_b2)


def pack_params(raw):
    """Pack one layer's raw (in,out)-layout weights into the fused kernel layout."""
    H, hid = raw["s_w1"].shape
    w1 = jnp.concatenate([raw["s_w1"].T, raw["t_w1"].T], axis=0)          # (2*hid, H)
    b1 = jnp.concatenate([raw["s_b1"].T, raw["t_b1"].T], axis=0)          # (2*hid, 1)
    w2 = jnp.zeros((2 * H, 2 * hid), jnp.float32)
    w2 = w2.at[:H, :hid].set(raw["s_w2"].T).at[H:, hid:].set(raw["t_w2"].T)
    b2 = jnp.concatenate([raw["s_b2"].T, raw["t_b2"].T], axis=0)          # (2*H, 1)
    return w1, b1, w2, b2


def stack_packed(raw_list):
    """Stack L layers of packed params along a new leading axis (done once, off hot path)."""
    packed = [pack_params(r) for r in raw_list]
    return tuple(jnp.stack([p[i] for p in packed], axis=0) for i in range(4))


# ----------------------------------------------------------------------------- reference
def reference_affine_layer(phi, raw, i_affine):
    """Pure-JAX mirror of the PyTorch AffineLayer.forward."""
    H = phi.shape[1] // 2
    if i_affine % 2 == 0:
        phi_a, phi_b = phi[:, :H], phi[:, H:]
    else:
        phi_a, phi_b = phi[:, H:], phi[:, :H]
    s = _leaky(_leaky(phi_a @ raw["s_w1"] + raw["s_b1"]) @ raw["s_w2"] + raw["s_b2"])
    t = _leaky(_leaky(phi_a @ raw["t_w1"] + raw["t_b1"]) @ raw["t_w2"] + raw["t_b2"])
    z_b = jnp.exp(s) * phi_b + t
    if i_affine % 2 == 0:
        return jnp.concatenate([phi_a, z_b], axis=1)
    return jnp.concatenate([z_b, phi_a], axis=1)


# ----------------------------------------------------------------------------- main
if __name__ == "__main__":
    # Module config: size_in=32, s_hidden_shape=(16,), t_hidden_shape=(16,)
    SIZE_IN = 32
    HIDDEN = 16

    key = jax.random.PRNGKey(0)
    k_phi, k_l0, k_l1 = jax.random.split(key, 3)

    raw0 = init_affine_layer_params(k_l0, SIZE_IN, HIDDEN)
    raw1 = init_affine_layer_params(k_l1, SIZE_IN, HIDDEN)

    packed_single = stack_packed([raw0])         # L = 1 (== AffineLayer.forward)
    packed_pair = stack_packed([raw0, raw1])     # L = 2 fused coupling stack

    ok = True

    # Single coupling layer, both partition parities, several batch sizes:
    #   8    -> single tiny full block
    #   640  -> one exact 640-row tile
    #   1000 -> cdiv grid with a masked ragged last tile
    for n_states in (8, 640, 1000):
        phi = jax.random.normal(k_phi, (n_states, SIZE_IN), jnp.float32)
        for i_aff in (0, 1):
            out = affine_layer_forward(phi, packed_single, i_affine=i_aff)
            out = jax.block_until_ready(out)
            ref = reference_affine_layer(phi, raw0, i_aff)
            ok = ok and bool(jnp.allclose(out, ref, atol=1e-4, rtol=1e-4))

    # Fused 2-layer stack (i_affine = 0 then 1) in ONE pallas_call — one HBM round trip.
    phi = jax.random.normal(k_phi, (640, SIZE_IN), jnp.float32)
    out2 = jax.block_until_ready(
        coupling_stack_forward(phi, *packed_pair, i_affine=0))
    ref2 = reference_affine_layer(reference_affine_layer(phi, raw0, 0), raw1, 1)
    ok = ok and bool(jnp.allclose(out2, ref2, atol=1e-4, rtol=1e-4))

    print("KERNEL_OK" if ok else "MISMATCH")
</pallas_src>

<mosaic_0001>
module attributes {stable_mosaic.version = 11 : i64} {
  func.func @kernel(%arg0: i32, %arg1: memref<8x32xf32, #tpu.memory_space<vmem>>, %arg2: memref<1x32x16xf32, #tpu.memory_space<vmem>>, %arg3: memref<1x32x1xf32, #tpu.memory_space<vmem>>, %arg4: memref<1x32x32xf32, #tpu.memory_space<vmem>>, %arg5: memref<1x32x1xf32, #tpu.memory_space<vmem>>, %arg6: memref<8x32xf32, #tpu.memory_space<vmem>>) attributes {dimension_semantics = [#tpu.dimension_semantics<parallel>], iteration_bounds = array<i64: 1>, scalar_prefetch = 0 : i64, scratch_operands = 0 : i64, tpu.core_type = #tpu.core_type<tc>, window_params = [{transform_indices = @transform_0, window_bounds = array<i64: 8, 32>}, {pipeline_mode = #tpu.pipeline_mode<synchronous>, transform_indices = @transform_1, window_bounds = array<i64: 1, 32, 16>}, {pipeline_mode = #tpu.pipeline_mode<synchronous>, transform_indices = @transform_2, window_bounds = array<i64: 1, 32, 1>}, {pipeline_mode = #tpu.pipeline_mode<synchronous>, transform_indices = @transform_3, window_bounds = array<i64: 1, 32, 32>}, {pipeline_mode = #tpu.pipeline_mode<synchronous>, transform_indices = @transform_4, window_bounds = array<i64: 1, 32, 1>}, {transform_indices = @transform_5, window_bounds = array<i64: 8, 32>}]} {
    %c0 = arith.constant 0 : index
    %c0_0 = arith.constant 0 : index
    %0 = vector.load %arg1[%c0, %c0_0] : memref<8x32xf32, #tpu.memory_space<vmem>>, vector<8x32xf32>
    %1 = tpu.transpose %0, [1, 0] : vector<8x32xf32> -> vector<32x8xf32>
    %2 = vector.extract_strided_slice %1 {offsets = [0, 0], sizes = [16, 8], strides = [1, 1]} : vector<32x8xf32> to vector<16x8xf32>
    %3 = vector.extract_strided_slice %1 {offsets = [16, 0], sizes = [16, 8], strides = [1, 1]} : vector<32x8xf32> to vector<16x8xf32>
    %c0_1 = arith.constant 0 : index
    %c0_2 = arith.constant 0 : index
    %c0_3 = arith.constant 0 : index
    %4 = vector.load %arg2[%c0_1, %c0_2, %c0_3] : memref<1x32x16xf32, #tpu.memory_space<vmem>>, vector<1x32x16xf32>
    %5 = vector.shape_cast %4 : vector<1x32x16xf32> to vector<32x16xf32>
    %cst = arith.constant dense<0.000000e+00> : vector<32x8xf32>
    %6 = tpu.matmul %5, %2, %cst {dimension_numbers = #tpu.dot_dimension_numbers<[1], [0], [0], [1], [0, 0, 1, 1], [], []>} : vector<32x16xf32>, vector<16x8xf32>, vector<32x8xf32> -> vector<32x8xf32>
    %c0_4 = arith.constant 0 : index
    %c0_5 = arith.constant 0 : index
    %c0_6 = arith.constant 0 : index
    %7 = vector.load %arg3[%c0_4, %c0_5, %c0_6] : memref<1x32x1xf32, #tpu.memory_space<vmem>>, vector<1x32x1xf32>
    %8 = vector.shape_cast %7 : vector<1x32x1xf32> to vector<32x1xf32>
    %9 = vector.broadcast %8 : vector<32x1xf32> to vector<32x8xf32>
    %10 = arith.addf %6, %9 : vector<32x8xf32>
    %cst_7 = arith.constant 0.000000e+00 : f32
    %11 = vector.broadcast %cst_7 : f32 to vector<32x8xf32>
    %12 = arith.cmpf oge, %10, %11 : vector<32x8xf32>
    %cst_8 = arith.constant 0.00999999977 : f32
    %13 = vector.broadcast %cst_8 : f32 to vector<32x8xf32>
    %14 = arith.mulf %13, %10 : vector<32x8xf32>
    %15 = arith.select %12, %10, %14 : vector<32x8xi1>, vector<32x8xf32>
    %c0_9 = arith.constant 0 : index
    %c0_10 = arith.constant 0 : index
    %c0_11 = arith.constant 0 : index
    %16 = vector.load %arg4[%c0_9, %c0_10, %c0_11] : memref<1x32x32xf32, #tpu.memory_space<vmem>>, vector<1x32x32xf32>
    %17 = vector.shape_cast %16 : vector<1x32x32xf32> to vector<32x32xf32>
    %cst_12 = arith.constant dense<0.000000e+00> : vector<32x8xf32>
    %18 = tpu.matmul %17, %15, %cst_12 {dimension_numbers = #tpu.dot_dimension_numbers<[1], [0], [0], [1], [0, 0, 1, 1], [], []>} : vector<32x32xf32>, vector<32x8xf32>, vector<32x8xf32> -> vector<32x8xf32>
    %c0_13 = arith.constant 0 : index
    %c0_14 = arith.constant 0 : index
    %c0_15 = arith.constant 0 : index
    %19 = vector.load %arg5[%c0_13, %c0_14, %c0_15] : memref<1x32x1xf32, #tpu.memory_space<vmem>>, vector<1x32x1xf32>
    %20 = vector.shape_cast %19 : vector<1x32x1xf32> to vector<32x1xf32>
    %21 = vector.broadcast %20 : vector<32x1xf32> to vector<32x8xf32>
    %22 = arith.addf %18, %21 : vector<32x8xf32>
    %cst_16 = arith.constant 0.000000e+00 : f32
    %23 = vector.broadcast %cst_16 : f32 to vector<32x8xf32>
    %24 = arith.cmpf oge, %22, %23 : vector<32x8xf32>
    %cst_17 = arith.constant 0.00999999977 : f32
    %25 = vector.broadcast %cst_17 : f32 to vector<32x8xf32>
    %26 = arith.mulf %25, %22 : vector<32x8xf32>
    %27 = arith.select %24, %22, %26 : vector<32x8xi1>, vector<32x8xf32>
    %28 = vector.extract_strided_slice %27 {offsets = [0, 0], sizes = [16, 8], strides = [1, 1]} : vector<32x8xf32> to vector<16x8xf32>
    %29 = vector.extract_strided_slice %27 {offsets = [16, 0], sizes = [16, 8], strides = [1, 1]} : vector<32x8xf32> to vector<16x8xf32>
    %30 = math.exp %28 : vector<16x8xf32>
    %31 = arith.mulf %30, %3 : vector<16x8xf32>
    %32 = arith.addf %31, %29 : vector<16x8xf32>
    %33 = tpu.concatenate %2, %32 in 0 : vector<16x8xf32>, vector<16x8xf32> -> vector<32x8xf32>
    %34 = tpu.transpose %33, [1, 0] : vector<32x8xf32> -> vector<8x32xf32>
    %c0_18 = arith.constant 0 : index
    %c0_19 = arith.constant 0 : index
    %35 = vector.load %arg6[%c0_18, %c0_19] : memref<8x32xf32, #tpu.memory_space<vmem>>, vector<8x32xf32>
    tpu.vector_store %arg6[%c0_18, %c0_19], %34 {strides = array<i32>} : memref<8x32xf32, #tpu.memory_space<vmem>>, vector<8x32xf32>,
    return
  }
  func.func @transform_0(%arg0: i32) -> (i32, i32) {
    %c0_i32 = arith.constant 0 : i32
    %c0_i32_0 = arith.constant 0 : i32
    return %arg0, %c0_i32 : i32, i32
  }
  func.func @transform_1(%arg0: i32) -> (i32, i32, i32) {
    %c0_i32 = arith.constant 0 : i32
    %c0_i32_0 = arith.constant 0 : i32
    %c0_i32_1 = arith.constant 0 : i32
    %c0_i32_2 = arith.constant 0 : i32
    return %c0_i32, %c0_i32_0, %c0_i32_1 : i32, i32, i32
  }
  func.func @transform_2(%arg0: i32) -> (i32, i32, i32) {
    %c0_i32 = arith.constant 0 : i32
    %c0_i32_0 = arith.constant 0 : i32
    %c0_i32_1 = arith.constant 0 : i32
    %c0_i32_2 = arith.constant 0 : i32
    return %c0_i32, %c0_i32_0, %c0_i32_1 : i32, i32, i32
  }
  func.func @transform_3(%arg0: i32) -> (i32, i32, i32) {
    %c0_i32 = arith.constant 0 : i32
    %c0_i32_0 = arith.constant 0 : i32
    %c0_i32_1 = arith.constant 0 : i32
    %c0_i32_2 = arith.constant 0 : i32
    return %c0_i32, %c0_i32_0, %c0_i32_1 : i32, i32, i32
  }
  func.func @transform_4(%arg0: i32) -> (i32, i32, i32) {
    %c0_i32 = arith.constant 0 : i32
    %c0_i32_0 = arith.constant 0 : i32
    %c0_i32_1 = arith.constant 0 : i32
    %c0_i32_2 = arith.constant 0 : i32
    return %c0_i32, %c0_i32_0, %c0_i32_1 : i32, i32, i32
  }
  func.func @transform_5(%arg0: i32) -> (i32, i32) {
    %c0_i32 = arith.constant 0 : i32
    %c0_i32_0 = arith.constant 0 : i32
    return %arg0, %c0_i32 : i32, i32
  }
}

</mosaic_0001>

<bundles_post_ra>
// kernel: coupling_stack_forward.1
= control target key start
LH: loop header
LB: loop body
LE: loop exit
PB: predicated region body
PF: predicated region fallthrough
CT: control target
= control target key end

     0   :  { %v476_v2 = vmov 0   ;;  %s586_s0 = inlined_call_operand.vmem [shape: f32[8,32], index: 0, kind: input, shape index: {}]   ;;  %s587_s1 = inlined_call_operand.vmem [shape: f32[1,32,16], index: 1, kind: input, shape index: {}]   ;;  %s588_s2 = inlined_call_operand.vmem [shape: f32[1,32,1], index: 2, kind: input, shape index: {}]   ;;  %s589_s3 = inlined_call_operand.vmem [shape: f32[1,32,32], index: 3, kind: input, shape index: {}]   ;;  %s590_s4 = inlined_call_operand.vmem [shape: f32[1,32,1], index: 4, kind: input, shape index: {}]   ;;  %s591_s5 = inlined_call_operand.hbm [shape: f32[8,32], index: 5, kind: output, shape index: {}]  }
   0x1   :  { %v21_v0 = vld [vmem:[%s586_s0] sm:$0xff]  ;;  %v59_v1 = vld [vmem:[%s588_s2 + $0x8] sm:$0xff]  ;;  %447 = vset.pattern.permute.xlu1 %v476_v2 }
   0x2   :  { %22 = vxpose.xlu0.b32.start.end [1/1] (short) (narrow) %v21_v0, 32  ;;  %69 = vperm.xlu1 %447, %v59_v1  }
   0x3   :  { %10 = vsyncpa [#allocation3], 0  ;;  %v60_v3 = vld [vmem:[%s588_s2 + $0x10] sm:$0xff]  ;;  %v61_v4 = vld [vmem:[%s588_s2 + $0x18] sm:$0xff]  ;;  %vm82_vm0 = vcmask 130048   ;;  %vm220_vm1 = vcmask 261120  }
   0x4   :  { %v54_v5 = vld [vmem:[%s587_s1] sm:$0xff]  ;;  %v197_v7 = vld [vmem:[%s590_s4 + $0x8] sm:$0xff]  ;;  %v198_v8 = vld [vmem:[%s590_s4 + $0x10] sm:$0xff] }
   0x5   :  { %411 = vmatprep.mubr.msk.f32.mxu0 %vm82_vm0, %v54_v5  ;;  %v196_v6 = vld [vmem:[%s590_s4] sm:$0xff]  ;;  %v199_v9 = vld [vmem:[%s590_s4 + $0x18] sm:$0xff]  ;;  %v55_v14 = vld [vmem:[%s587_s1 + $0x8] sm:$0xff] }
   0x6   :  { %74 = vperm.xlu1 %447, %v60_v3   ;;  %v58_v10 = vld [vmem:[%s588_s2] sm:$0xff]  ;;  %v56_v15 = vld [vmem:[%s587_s1 + $0x10] sm:$0xff]  ;;  %v57_v16 = vld [vmem:[%s587_s1 + $0x18] sm:$0xff] }
   0x7   :  { %v192_v17 = vld [vmem:[%s589_s3] sm:$0xff]  ;;  %v193_v42 = vld [vmem:[%s589_s3 + $0x8] sm:$0xff]  ;;  %v194_v43 = vld [vmem:[%s589_s3 + $0x10] sm:$0xff] }
   0x8   :  { %425 = vmatprep.mubr.msk.f32.mxu1 %vm220_vm1, %v192_v17  ;;  %v195_v44 = vld [vmem:[%s589_s3 + $0x18] sm:$0xff]  ;;  %s477_s3 = smov [#allocation2]  }
   0x9   :  { %s377_s23 = sshll.u32 %s477_s3, 4  ;;  %s378_s23 = int_to_ptr.vmem [resolvable:$true] %s377_s23 }
   0xa   :  { %79 = vperm.xlu1 %447, %v61_v4   ;;  %s452_s24 = scalar_lea.vmem %s378_s23, 128  ;;  %p457_p1 = scmp.lt.s32.totalorder %s378_s23, %s378_s23 }
   0xb   :  { %p453_p0 = scmp.ne.s32.totalorder %s378_s23, %s452_s24  ;;  %p458_p2 = scmp.lt.s32.totalorder %s452_s24, %s452_s24 }
   0xd   :  { %p459_p3 = por %p458_p2, %p457_p1 }
   0xe   :  { %202 = vperm.xlu1 %447, %v196_v6  }
   0xf   :  { %p460_p4 = pnand %p459_p3, %p453_p0 }
  0x12   :  { %207 = vperm.xlu1 %447, %v197_v7  }
  0x16   :  { %212 = vperm.xlu1 %447, %v198_v8  }
  0x1a   :  { %217 = vperm.xlu1 %447, %v199_v9  }
  0x2b   :  { %446 = vset.pattern.permute.xlu0 %v476_v2 }
  0x37   :  { %64 = vperm.xlu0 %446, %v58_v10  }
  0x81   :  { %v70_v19 = vpop.permute.xlu1 %69 }
  0x82   :  { %v38_v11 = vpop.trf.xlu0 }
  0x83   :  { %338 = vxpose.xlu1.b32.start [1/4] (short) (narrow) %v38_v11, 8 }
  0x85   :  { %v75_v21 = vpop.permute.xlu1 %74 }
  0x86   :  { %v39_v12 = vpop.trf.xlu0 }
  0x87   :  { %339 = vxpose.xlu1.b32.cont [2/4] (short) (narrow) %v39_v12, 8  ;;  %v431_v13 = vpack.c.bf16 %v39_v12, %v38_v11 }
  0x89   :  { %432 = vmatprep.subr.bf16.mxu0 %v431_v13  ;;  %v80_v28 = vpop.permute.xlu1 %79 }
  0x8a   :  { %434 = vmatpush3.bf16.msra.mxu0 %v431_v13  ;;  %v555_v18 = vpop.trf.xlu0 }
  0x8d   :  { %412 = vmatmul.mubr.msk.f32.vlgmr.msra.gmra.mrb[0].mxu0 %vm82_vm0, %v55_v14  ;;  %v203_v45 = vpop.permute.xlu1 %202 }
  0x8e   :  { %414 = vmatprep.mubr.msk.f32.mxu0 %vm82_vm0, %v56_v15  ;;  %v557_v20 = vpop.trf.xlu0 }
  0x91   :  { %415 = vmatmul.mubr.msk.f32.gmra.mrb[2].mxu0 %vm82_vm0, %v57_v16  ;;  %v208_v46 = vpop.permute.xlu1 %207 }
  0x95   :  { %v213_v54 = vpop.permute.xlu1 %212 }
  0x99   :  { %v218_v60 = vpop.permute.xlu1 %217 }
  0xb6   :  { %v65_v22 = vpop.permute.xlu0 %64 }
 0x160   :  { %v413_v23 = vpop.f32.mrb[0].mxu0 }
 0x161   :  { %v167_v24 = vadd.f32 %v413_v23, %v70_v19  ;;  %v161_v25 = vpop.f32.mrb[1].mxu0 }
 0x162   :  { %v162_v26 = vadd.f32 %v161_v25, %v65_v22 }
 0x163   :  { %v185_v27 = vmul.f32 0.01, %v167_v24  ;;  %vm181_vm2 = vcmp.ge.f32.partialorder %v167_v24, 0.0 }
 0x164   :  { %v184_v29 = vmul.f32 0.01, %v162_v26  ;;  %v416_v30 = vpop.f32.mrb[2].mxu0  ;;  %vm180_vm3 = vcmp.ge.f32.partialorder %v162_v26, 0.0 }
 0x165   :  { %v177_v31 = vadd.f32 %v416_v30, %v80_v28  ;;  %v171_v32 = vpop.f32.mrb[3].mxu0  ;;  %v189_v33 = vsel %vm181_vm2, %v167_v24, %v185_v27 }
 0x166   :  { %v172_v34 = vadd.f32 %v171_v32, %v75_v21  ;;  %v188_v35 = vsel %vm180_vm3, %v162_v26, %v184_v29 }
 0x167   :  { %vm183_vm4 = vcmp.ge.f32.partialorder %v177_v31, 0.0  ;;  %v187_v36 = vmul.f32 0.01, %v177_v31  ;;  %v435_v37 = vpack.c.bf16 %v189_v33, %v188_v35 }
 0x168   :  { %vm182_vm5 = vcmp.ge.f32.partialorder %v172_v34, 0.0  ;;  %v186_v38 = vmul.f32 0.01, %v172_v34 }
 0x169   :  { %436 = vmatprep.subr.bf16.mxu1 %v435_v37  ;;  %v191_v39 = vsel %vm183_vm4, %v177_v31, %v187_v36 }
 0x16a   :  { %438 = vmatpush3.bf16.msra.mxu1 %v435_v37  ;;  %v190_v40 = vsel %vm182_vm5, %v172_v34, %v186_v38 }
 0x16b   :  { %v439_v41 = vpack.c.bf16 %v191_v39, %v190_v40 }
 0x16d   :  { %440 = vmatprep.subr.bf16.mxu1 %v439_v41 }
 0x16e   :  { %442 = vmatpush3.bf16.msra.mxu1 %v439_v41 }
 0x171   :  { %426 = vmatmul.mubr.msk.f32.vlgmr.msra.gmra.mrb[0].mxu1 %vm220_vm1, %v193_v42 }
 0x172   :  { %428 = vmatprep.mubr.msk.f32.mxu1 %vm220_vm1, %v194_v43 }
 0x175   :  { %429 = vmatmul.mubr.msk.f32.gmra.mrb[2].mxu1 %vm220_vm1, %v195_v44 }
 0x244   :  { %v427_v47 = vpop.f32.mrb[0].mxu1 }
 0x245   :  { %v305_v48 = vadd.f32 %v427_v47, %v208_v46  ;;  %v299_v49 = vpop.f32.mrb[1].mxu1 }
 0x246   :  { %v300_v50 = vadd.f32 %v299_v49, %v203_v45 }
 0x247   :  { %vm319_vm6 = vcmp.ge.f32.partialorder %v305_v48, 0.0  ;;  %v323_v51 = vmul.f32 0.01, %v305_v48 }
 0x248   :  { %vm318_vm7 = vcmp.ge.f32.partialorder %v300_v50, 0.0  ;;  %v322_v52 = vmul.f32 0.01, %v300_v50  ;;  %v430_v53 = vpop.f32.mrb[2].mxu1 }
 0x249   :  { %v327_v55 = vsel %vm319_vm6, %v305_v48, %v323_v51  ;;  %v309_v56 = vpop.f32.mrb[3].mxu1  ;;  %v315_v61 = vadd.f32 %v430_v53, %v218_v60 }
 0x24a   :  { %v332_v57 = vmul.f32 1.442695, %v327_v55  ;;  %v326_v58 = vsel %vm318_vm7, %v300_v50, %v322_v52  ;;  %v310_v62 = vadd.f32 %v309_v56, %v213_v54 }
 0x24b   :  { %v330_v59 = vmul.f32 1.442695, %v326_v58  ;;  %v325_v63 = vmul.f32 0.01, %v315_v61  ;;  %vm321_vm8 = vcmp.ge.f32.partialorder %v315_v61, 0.0 }
 0x24c   :  { %448 = vpow2.f32 %v332_v57  ;;  %v324_v0 = vmul.f32 0.01, %v310_v62  ;;  %vm320_vm9 = vcmp.ge.f32.partialorder %v310_v62, 0.0 }
 0x24d   :  { %450 = vpow2.f32 %v330_v59  ;;  %v329_v4 = vsel %vm321_vm8, %v315_v61, %v325_v63 }
 0x24e   :  { %v328_v7 = vsel %vm320_vm9, %v310_v62, %v324_v0 }
 0x256   :  { %v449_v1 = vpop.eup %448 }
 0x257   :  { %v451_v2 = vpop.eup %450  ;;  %v335_v3 = vmul.f32 %v449_v1, %v557_v20 }
 0x258   :  { %v334_v5 = vmul.f32 %v451_v2, %v555_v18 }
 0x259   :  { %v337_v6 = vadd.f32 %v335_v3, %v329_v4 }
 0x25a   :  { %v336_v8 = vadd.f32 %v334_v5, %v328_v7 }
 0x25c   :  { %340 = vxpose.xlu1.b32.cont [3/4] (short) (narrow) %v336_v8, 8 }
 0x260   :  { %341 = vxpose.xlu1.b32.end [4/4] (short) (narrow) %v337_v6, 8 }
 0x2d4   :  { %v354_v9 = vpop.trf.xlu1 }
 0x2d5   :  { %370 = vst.msk [vmem:[#allocation2] sm:$0xff] %vm220_vm1, %v354_v9 }
 0x2d6   :  { %463 = shalt.err (!%p460_p4)
}
 0x2d7   :  { %s464_s0 = scalar_lea.hbm %s591_s5, 128 }
 0x2d8   :  { %p465_p5 = scmp.ne.s32.totalorder %s591_s5, %s464_s0  ;;  %p468_p6 = scmp.lt.u32.totalorder %s464_s0, %s591_s5 }
 0x2da   :  { %p470_p7 = pnand %p468_p6, %p465_p5 }
 0x2dc   :  { %473 = shalt.err (!%p470_p7)
}
 0x2dd   :  { %380 = dma.vmem_to_hbm [thread:$0]  %s378_s23, 128, %s591_s5, [#allocation3]  }
 0x2de   :  { %474 = dma.done.wait [#allocation3], 128  }
 0x2df   :  { %475 = vsyncadd [#allocation3], 4294967168 }
 0x2e0   :  { %384 = vsyncpa [#allocation3], 1 }

</bundles_post_ra>
